<compile_context>
chip_gen: v5e
topology: v5e:2x2
jax: 0.10.0
libtpu: 0.0.40
codegen_flags: <defaults>
</compile_context>

<pallas_src>
import jax
import jax.numpy as jnp
from jax import lax
from jax.experimental import pallas as pl
from jax.experimental.pallas import tpu as pltpu

# ---- synthetic "config" (small, consistent with the module's __init__) ----
VOCAB_SIZE = 100          # len(config.ws)
EMBEDDING_DIM = 32        # config.embedding_dim
MAX_LEN = 16              # config.max_len
PAD_IDX = 0               # config.ws.PAD
NUM_CLASSES = 2
INPUT_DIM = MAX_LEN * EMBEDDING_DIM          # 512

VOCAB_PAD = 128           # vocab padded to one lane group (one-hot MXU gather)
CLASS_PAD = 128           # classes padded so logits / output stores are lane-dense


def imdb_fused_kernel(ids_ref, emb_ref, w_ref, b_ref, o_ref):
    """Fused embedding gather (one-hot MXU) + flatten + FC + log_softmax.

    ids_ref: [TB, MAX_LEN] int32
    emb_ref: [VOCAB_PAD, EMBEDDING_DIM] f32   (resident; rows >= VOCAB_SIZE are 0)
    w_ref:   [INPUT_DIM, CLASS_PAD] f32       (resident; cols >= NUM_CLASSES are 0)
    b_ref:   [1, CLASS_PAD] f32               (resident)
    o_ref:   [TB, CLASS_PAD] f32              (valid log-probs in cols [0, NUM_CLASSES))
    """
    ids = ids_ref[...]                                     # [TB, L] int32
    table = emb_ref[...]                                   # [V_PAD, D] f32

    vocab_iota = lax.broadcasted_iota(jnp.int32, (1, VOCAB_PAD), 1)

    # Static unroll over sequence positions (MAX_LEN=16): each step is a
    # one-hot gather matmul [TB,128] @ [128,D].  The per-position embeddings
    # are concatenated along lanes to form the flattened feature block.
    cols = []
    for l in range(MAX_LEN):
        onehot = (ids[:, l:l + 1] == vocab_iota).astype(jnp.float32)        # [TB, V_PAD]
        cols.append(jnp.dot(onehot, table, preferred_element_type=jnp.float32))
    x = jnp.concatenate(cols, axis=-1)                     # [TB, L*D] = [TB, 512]

    # Single lane-dense FC matmul + bias broadcast over the batch tile.
    logits = jnp.dot(x, w_ref[...], preferred_element_type=jnp.float32) + b_ref[...]

    # Mask padded class columns before the (stable) log_softmax.
    col = lax.broadcasted_iota(jnp.int32, logits.shape, 1)
    logits = jnp.where(col < NUM_CLASSES, logits, -1e30)

    m = jnp.max(logits, axis=-1, keepdims=True)
    shifted = logits - m
    lse = jnp.log(jnp.sum(jnp.exp(shifted), axis=-1, keepdims=True))
    o_ref[...] = (shifted - lse).astype(o_ref.dtype)


def _round_up(x, m):
    return (x + m - 1) // m * m


@jax.jit
def imdb_forward(input_ids, emb_table, fc_w, fc_b):
    """input_ids: int32 [B, MAX_LEN] -> log-probs float32 [B, NUM_CLASSES]."""
    B = input_ids.shape[0]
    TB = min(512, _round_up(B, 8))        # batch tile: multiple of 8 sublanes
    B_pad = _round_up(B, TB)

    ids = input_ids.astype(jnp.int32)
    if B_pad != B:                        # pad batch; padded rows sliced off below
        ids = jnp.pad(ids, ((0, B_pad - B), (0, 0)), constant_values=PAD_IDX)

    # One-time zero-padded parameter layouts (exactness preserved: padded
    # vocab rows and class columns are zero / masked).
    emb_pad = jnp.zeros((VOCAB_PAD, EMBEDDING_DIM), jnp.float32)
    emb_pad = emb_pad.at[:VOCAB_SIZE].set(emb_table.astype(jnp.float32))
    w_pad = jnp.zeros((INPUT_DIM, CLASS_PAD), jnp.float32)
    w_pad = w_pad.at[:, :NUM_CLASSES].set(fc_w.astype(jnp.float32))
    b_pad = jnp.zeros((1, CLASS_PAD), jnp.float32)
    b_pad = b_pad.at[:, :NUM_CLASSES].set(
        fc_b.reshape(1, NUM_CLASSES).astype(jnp.float32))

    out_pad = pl.pallas_call(
        imdb_fused_kernel,
        out_shape=jax.ShapeDtypeStruct((B_pad, CLASS_PAD), jnp.float32),
        grid=(B_pad // TB,),
        in_specs=[
            pl.BlockSpec((TB, MAX_LEN), lambda i: (i, 0)),                # ids tile
            pl.BlockSpec((VOCAB_PAD, EMBEDDING_DIM), lambda i: (0, 0)),   # emb table
            pl.BlockSpec((INPUT_DIM, CLASS_PAD), lambda i: (0, 0)),       # fc weight
            pl.BlockSpec((1, CLASS_PAD), lambda i: (0, 0)),               # fc bias
        ],
        out_specs=pl.BlockSpec((TB, CLASS_PAD), lambda i: (i, 0)),
        compiler_params=pltpu.CompilerParams(
            dimension_semantics=("parallel",),   # batch tiles split across TCs
        ),
    )(ids, emb_pad, w_pad, b_pad)

    return out_pad[:B, :NUM_CLASSES]


def _reference(input_ids, emb_table, fc_w, fc_b):
    emb = jnp.take(emb_table, input_ids, axis=0)
    x = emb.reshape(emb.shape[0], -1)
    logits = x @ fc_w + fc_b
    return jax.nn.log_softmax(logits, axis=-1)


if __name__ == "__main__":
    key = jax.random.PRNGKey(0)
    k_emb, k_w, k_b, k_ids = jax.random.split(key, 4)

    # Deterministic parameter init (shapes from the module's __init__).
    emb_table = jax.random.normal(k_emb, (VOCAB_SIZE, EMBEDDING_DIM), jnp.float32)
    emb_table = emb_table.at[PAD_IDX].set(0.0)  # padding_idx row is zero
    # PyTorch Linear weight is [2, INPUT_DIM]; we store it transposed [INPUT_DIM, 2].
    fc_w = jax.random.normal(k_w, (INPUT_DIM, NUM_CLASSES), jnp.float32) * 0.05
    fc_b = jax.random.normal(k_b, (NUM_CLASSES,), jnp.float32) * 0.05

    # Example input: batch of token-id sequences [B, MAX_LEN].
    batch = 2
    input_ids = jax.random.randint(k_ids, (batch, MAX_LEN), 0, VOCAB_SIZE, jnp.int32)

    out = imdb_forward(input_ids, emb_table, fc_w, fc_b)
    out = jax.block_until_ready(out)

    ref = _reference(input_ids, emb_table, fc_w, fc_b)
    assert out.shape == (batch, NUM_CLASSES)
    assert jnp.allclose(out, ref, atol=1e-4, rtol=1e-4), "mismatch vs JAX reference"

    print("KERNEL_OK")
</pallas_src>

<mosaic_0001>
module attributes {stable_mosaic.version = 11 : i64} {
  func.func @imdb_fused_kernel(%arg0: i32, %arg1: memref<8x16xi32, #tpu.memory_space<vmem>>, %arg2: memref<128x32xf32, #tpu.memory_space<vmem>>, %arg3: memref<512x128xf32, #tpu.memory_space<vmem>>, %arg4: memref<1x128xf32, #tpu.memory_space<vmem>>, %arg5: memref<8x128xf32, #tpu.memory_space<vmem>>) attributes {dimension_semantics = [#tpu.dimension_semantics<parallel>], iteration_bounds = array<i64: 1>, scalar_prefetch = 0 : i64, scratch_operands = 0 : i64, tpu.core_type = #tpu.core_type<tc>, window_params = [{transform_indices = @transform_0, window_bounds = array<i64: 8, 16>}, {pipeline_mode = #tpu.pipeline_mode<synchronous>, transform_indices = @transform_1, window_bounds = array<i64: 128, 32>}, {pipeline_mode = #tpu.pipeline_mode<synchronous>, transform_indices = @transform_2, window_bounds = array<i64: 512, 128>}, {pipeline_mode = #tpu.pipeline_mode<synchronous>, transform_indices = @transform_3, window_bounds = array<i64: 1, 128>}, {transform_indices = @transform_4, window_bounds = array<i64: 8, 128>}]} {
    %c0 = arith.constant 0 : index
    %c0_0 = arith.constant 0 : index
    %0 = vector.load %arg1[%c0, %c0_0] : memref<8x16xi32, #tpu.memory_space<vmem>>, vector<8x16xi32>
    %c0_1 = arith.constant 0 : index
    %c0_2 = arith.constant 0 : index
    %1 = vector.load %arg2[%c0_1, %c0_2] : memref<128x32xf32, #tpu.memory_space<vmem>>, vector<128x32xf32>
    %2 = tpu.iota {dimensions = array<i32: 1>} : vector<1x128xi32>
    %3 = vector.extract_strided_slice %0 {offsets = [0, 0], sizes = [8, 1], strides = [1, 1]} : vector<8x16xi32> to vector<8x1xi32>
    %4 = vector.broadcast %3 : vector<8x1xi32> to vector<8x128xi32>
    %5 = vector.broadcast %2 : vector<1x128xi32> to vector<8x128xi32>
    %6 = arith.cmpi eq, %4, %5 : vector<8x128xi32>
    %7 = arith.extui %6 : vector<8x128xi1> to vector<8x128xi32>
    %8 = arith.sitofp %7 : vector<8x128xi32> to vector<8x128xf32>
    %cst = arith.constant dense<0.000000e+00> : vector<8x32xf32>
    %9 = tpu.matmul %8, %1, %cst {dimension_numbers = #tpu.dot_dimension_numbers<[1], [0], [0], [1], [0, 0, 1, 1], [], []>} : vector<8x128xf32>, vector<128x32xf32>, vector<8x32xf32> -> vector<8x32xf32>
    %10 = vector.extract_strided_slice %0 {offsets = [0, 1], sizes = [8, 1], strides = [1, 1]} : vector<8x16xi32> to vector<8x1xi32>
    %11 = vector.broadcast %10 : vector<8x1xi32> to vector<8x128xi32>
    %12 = vector.broadcast %2 : vector<1x128xi32> to vector<8x128xi32>
    %13 = arith.cmpi eq, %11, %12 : vector<8x128xi32>
    %14 = arith.extui %13 : vector<8x128xi1> to vector<8x128xi32>
    %15 = arith.sitofp %14 : vector<8x128xi32> to vector<8x128xf32>
    %cst_3 = arith.constant dense<0.000000e+00> : vector<8x32xf32>
    %16 = tpu.matmul %15, %1, %cst_3 {dimension_numbers = #tpu.dot_dimension_numbers<[1], [0], [0], [1], [0, 0, 1, 1], [], []>} : vector<8x128xf32>, vector<128x32xf32>, vector<8x32xf32> -> vector<8x32xf32>
    %17 = vector.extract_strided_slice %0 {offsets = [0, 2], sizes = [8, 1], strides = [1, 1]} : vector<8x16xi32> to vector<8x1xi32>
    %18 = vector.broadcast %17 : vector<8x1xi32> to vector<8x128xi32>
    %19 = vector.broadcast %2 : vector<1x128xi32> to vector<8x128xi32>
    %20 = arith.cmpi eq, %18, %19 : vector<8x128xi32>
    %21 = arith.extui %20 : vector<8x128xi1> to vector<8x128xi32>
    %22 = arith.sitofp %21 : vector<8x128xi32> to vector<8x128xf32>
    %cst_4 = arith.constant dense<0.000000e+00> : vector<8x32xf32>
    %23 = tpu.matmul %22, %1, %cst_4 {dimension_numbers = #tpu.dot_dimension_numbers<[1], [0], [0], [1], [0, 0, 1, 1], [], []>} : vector<8x128xf32>, vector<128x32xf32>, vector<8x32xf32> -> vector<8x32xf32>
    %24 = vector.extract_strided_slice %0 {offsets = [0, 3], sizes = [8, 1], strides = [1, 1]} : vector<8x16xi32> to vector<8x1xi32>
    %25 = vector.broadcast %24 : vector<8x1xi32> to vector<8x128xi32>
    %26 = vector.broadcast %2 : vector<1x128xi32> to vector<8x128xi32>
    %27 = arith.cmpi eq, %25, %26 : vector<8x128xi32>
    %28 = arith.extui %27 : vector<8x128xi1> to vector<8x128xi32>
    %29 = arith.sitofp %28 : vector<8x128xi32> to vector<8x128xf32>
    %cst_5 = arith.constant dense<0.000000e+00> : vector<8x32xf32>
    %30 = tpu.matmul %29, %1, %cst_5 {dimension_numbers = #tpu.dot_dimension_numbers<[1], [0], [0], [1], [0, 0, 1, 1], [], []>} : vector<8x128xf32>, vector<128x32xf32>, vector<8x32xf32> -> vector<8x32xf32>
    %31 = vector.extract_strided_slice %0 {offsets = [0, 4], sizes = [8, 1], strides = [1, 1]} : vector<8x16xi32> to vector<8x1xi32>
    %32 = vector.broadcast %31 : vector<8x1xi32> to vector<8x128xi32>
    %33 = vector.broadcast %2 : vector<1x128xi32> to vector<8x128xi32>
    %34 = arith.cmpi eq, %32, %33 : vector<8x128xi32>
    %35 = arith.extui %34 : vector<8x128xi1> to vector<8x128xi32>
    %36 = arith.sitofp %35 : vector<8x128xi32> to vector<8x128xf32>
    %cst_6 = arith.constant dense<0.000000e+00> : vector<8x32xf32>
    %37 = tpu.matmul %36, %1, %cst_6 {dimension_numbers = #tpu.dot_dimension_numbers<[1], [0], [0], [1], [0, 0, 1, 1], [], []>} : vector<8x128xf32>, vector<128x32xf32>, vector<8x32xf32> -> vector<8x32xf32>
    %38 = vector.extract_strided_slice %0 {offsets = [0, 5], sizes = [8, 1], strides = [1, 1]} : vector<8x16xi32> to vector<8x1xi32>
    %39 = vector.broadcast %38 : vector<8x1xi32> to vector<8x128xi32>
    %40 = vector.broadcast %2 : vector<1x128xi32> to vector<8x128xi32>
    %41 = arith.cmpi eq, %39, %40 : vector<8x128xi32>
    %42 = arith.extui %41 : vector<8x128xi1> to vector<8x128xi32>
    %43 = arith.sitofp %42 : vector<8x128xi32> to vector<8x128xf32>
    %cst_7 = arith.constant dense<0.000000e+00> : vector<8x32xf32>
    %44 = tpu.matmul %43, %1, %cst_7 {dimension_numbers = #tpu.dot_dimension_numbers<[1], [0], [0], [1], [0, 0, 1, 1], [], []>} : vector<8x128xf32>, vector<128x32xf32>, vector<8x32xf32> -> vector<8x32xf32>
    %45 = vector.extract_strided_slice %0 {offsets = [0, 6], sizes = [8, 1], strides = [1, 1]} : vector<8x16xi32> to vector<8x1xi32>
    %46 = vector.broadcast %45 : vector<8x1xi32> to vector<8x128xi32>
    %47 = vector.broadcast %2 : vector<1x128xi32> to vector<8x128xi32>
    %48 = arith.cmpi eq, %46, %47 : vector<8x128xi32>
    %49 = arith.extui %48 : vector<8x128xi1> to vector<8x128xi32>
    %50 = arith.sitofp %49 : vector<8x128xi32> to vector<8x128xf32>
    %cst_8 = arith.constant dense<0.000000e+00> : vector<8x32xf32>
    %51 = tpu.matmul %50, %1, %cst_8 {dimension_numbers = #tpu.dot_dimension_numbers<[1], [0], [0], [1], [0, 0, 1, 1], [], []>} : vector<8x128xf32>, vector<128x32xf32>, vector<8x32xf32> -> vector<8x32xf32>
    %52 = vector.extract_strided_slice %0 {offsets = [0, 7], sizes = [8, 1], strides = [1, 1]} : vector<8x16xi32> to vector<8x1xi32>
    %53 = vector.broadcast %52 : vector<8x1xi32> to vector<8x128xi32>
    %54 = vector.broadcast %2 : vector<1x128xi32> to vector<8x128xi32>
    %55 = arith.cmpi eq, %53, %54 : vector<8x128xi32>
    %56 = arith.extui %55 : vector<8x128xi1> to vector<8x128xi32>
    %57 = arith.sitofp %56 : vector<8x128xi32> to vector<8x128xf32>
    %cst_9 = arith.constant dense<0.000000e+00> : vector<8x32xf32>
    %58 = tpu.matmul %57, %1, %cst_9 {dimension_numbers = #tpu.dot_dimension_numbers<[1], [0], [0], [1], [0, 0, 1, 1], [], []>} : vector<8x128xf32>, vector<128x32xf32>, vector<8x32xf32> -> vector<8x32xf32>
    %59 = vector.extract_strided_slice %0 {offsets = [0, 8], sizes = [8, 1], strides = [1, 1]} : vector<8x16xi32> to vector<8x1xi32>
    %60 = vector.broadcast %59 : vector<8x1xi32> to vector<8x128xi32>
    %61 = vector.broadcast %2 : vector<1x128xi32> to vector<8x128xi32>
    %62 = arith.cmpi eq, %60, %61 : vector<8x128xi32>
    %63 = arith.extui %62 : vector<8x128xi1> to vector<8x128xi32>
    %64 = arith.sitofp %63 : vector<8x128xi32> to vector<8x128xf32>
    %cst_10 = arith.constant dense<0.000000e+00> : vector<8x32xf32>
    %65 = tpu.matmul %64, %1, %cst_10 {dimension_numbers = #tpu.dot_dimension_numbers<[1], [0], [0], [1], [0, 0, 1, 1], [], []>} : vector<8x128xf32>, vector<128x32xf32>, vector<8x32xf32> -> vector<8x32xf32>
    %66 = vector.extract_strided_slice %0 {offsets = [0, 9], sizes = [8, 1], strides = [1, 1]} : vector<8x16xi32> to vector<8x1xi32>
    %67 = vector.broadcast %66 : vector<8x1xi32> to vector<8x128xi32>
    %68 = vector.broadcast %2 : vector<1x128xi32> to vector<8x128xi32>
    %69 = arith.cmpi eq, %67, %68 : vector<8x128xi32>
    %70 = arith.extui %69 : vector<8x128xi1> to vector<8x128xi32>
    %71 = arith.sitofp %70 : vector<8x128xi32> to vector<8x128xf32>
    %cst_11 = arith.constant dense<0.000000e+00> : vector<8x32xf32>
    %72 = tpu.matmul %71, %1, %cst_11 {dimension_numbers = #tpu.dot_dimension_numbers<[1], [0], [0], [1], [0, 0, 1, 1], [], []>} : vector<8x128xf32>, vector<128x32xf32>, vector<8x32xf32> -> vector<8x32xf32>
    %73 = vector.extract_strided_slice %0 {offsets = [0, 10], sizes = [8, 1], strides = [1, 1]} : vector<8x16xi32> to vector<8x1xi32>
    %74 = vector.broadcast %73 : vector<8x1xi32> to vector<8x128xi32>
    %75 = vector.broadcast %2 : vector<1x128xi32> to vector<8x128xi32>
    %76 = arith.cmpi eq, %74, %75 : vector<8x128xi32>
    %77 = arith.extui %76 : vector<8x128xi1> to vector<8x128xi32>
    %78 = arith.sitofp %77 : vector<8x128xi32> to vector<8x128xf32>
    %cst_12 = arith.constant dense<0.000000e+00> : vector<8x32xf32>
    %79 = tpu.matmul %78, %1, %cst_12 {dimension_numbers = #tpu.dot_dimension_numbers<[1], [0], [0], [1], [0, 0, 1, 1], [], []>} : vector<8x128xf32>, vector<128x32xf32>, vector<8x32xf32> -> vector<8x32xf32>
    %80 = vector.extract_strided_slice %0 {offsets = [0, 11], sizes = [8, 1], strides = [1, 1]} : vector<8x16xi32> to vector<8x1xi32>
    %81 = vector.broadcast %80 : vector<8x1xi32> to vector<8x128xi32>
    %82 = vector.broadcast %2 : vector<1x128xi32> to vector<8x128xi32>
    %83 = arith.cmpi eq, %81, %82 : vector<8x128xi32>
    %84 = arith.extui %83 : vector<8x128xi1> to vector<8x128xi32>
    %85 = arith.sitofp %84 : vector<8x128xi32> to vector<8x128xf32>
    %cst_13 = arith.constant dense<0.000000e+00> : vector<8x32xf32>
    %86 = tpu.matmul %85, %1, %cst_13 {dimension_numbers = #tpu.dot_dimension_numbers<[1], [0], [0], [1], [0, 0, 1, 1], [], []>} : vector<8x128xf32>, vector<128x32xf32>, vector<8x32xf32> -> vector<8x32xf32>
    %87 = vector.extract_strided_slice %0 {offsets = [0, 12], sizes = [8, 1], strides = [1, 1]} : vector<8x16xi32> to vector<8x1xi32>
    %88 = vector.broadcast %87 : vector<8x1xi32> to vector<8x128xi32>
    %89 = vector.broadcast %2 : vector<1x128xi32> to vector<8x128xi32>
    %90 = arith.cmpi eq, %88, %89 : vector<8x128xi32>
    %91 = arith.extui %90 : vector<8x128xi1> to vector<8x128xi32>
    %92 = arith.sitofp %91 : vector<8x128xi32> to vector<8x128xf32>
    %cst_14 = arith.constant dense<0.000000e+00> : vector<8x32xf32>
    %93 = tpu.matmul %92, %1, %cst_14 {dimension_numbers = #tpu.dot_dimension_numbers<[1], [0], [0], [1], [0, 0, 1, 1], [], []>} : vector<8x128xf32>, vector<128x32xf32>, vector<8x32xf32> -> vector<8x32xf32>
    %94 = vector.extract_strided_slice %0 {offsets = [0, 13], sizes = [8, 1], strides = [1, 1]} : vector<8x16xi32> to vector<8x1xi32>
    %95 = vector.broadcast %94 : vector<8x1xi32> to vector<8x128xi32>
    %96 = vector.broadcast %2 : vector<1x128xi32> to vector<8x128xi32>
    %97 = arith.cmpi eq, %95, %96 : vector<8x128xi32>
    %98 = arith.extui %97 : vector<8x128xi1> to vector<8x128xi32>
    %99 = arith.sitofp %98 : vector<8x128xi32> to vector<8x128xf32>
    %cst_15 = arith.constant dense<0.000000e+00> : vector<8x32xf32>
    %100 = tpu.matmul %99, %1, %cst_15 {dimension_numbers = #tpu.dot_dimension_numbers<[1], [0], [0], [1], [0, 0, 1, 1], [], []>} : vector<8x128xf32>, vector<128x32xf32>, vector<8x32xf32> -> vector<8x32xf32>
    %101 = vector.extract_strided_slice %0 {offsets = [0, 14], sizes = [8, 1], strides = [1, 1]} : vector<8x16xi32> to vector<8x1xi32>
    %102 = vector.broadcast %101 : vector<8x1xi32> to vector<8x128xi32>
    %103 = vector.broadcast %2 : vector<1x128xi32> to vector<8x128xi32>
    %104 = arith.cmpi eq, %102, %103 : vector<8x128xi32>
    %105 = arith.extui %104 : vector<8x128xi1> to vector<8x128xi32>
    %106 = arith.sitofp %105 : vector<8x128xi32> to vector<8x128xf32>
    %cst_16 = arith.constant dense<0.000000e+00> : vector<8x32xf32>
    %107 = tpu.matmul %106, %1, %cst_16 {dimension_numbers = #tpu.dot_dimension_numbers<[1], [0], [0], [1], [0, 0, 1, 1], [], []>} : vector<8x128xf32>, vector<128x32xf32>, vector<8x32xf32> -> vector<8x32xf32>
    %108 = vector.extract_strided_slice %0 {offsets = [0, 15], sizes = [8, 1], strides = [1, 1]} : vector<8x16xi32> to vector<8x1xi32>
    %109 = vector.broadcast %108 : vector<8x1xi32> to vector<8x128xi32>
    %110 = vector.broadcast %2 : vector<1x128xi32> to vector<8x128xi32>
    %111 = arith.cmpi eq, %109, %110 : vector<8x128xi32>
    %112 = arith.extui %111 : vector<8x128xi1> to vector<8x128xi32>
    %113 = arith.sitofp %112 : vector<8x128xi32> to vector<8x128xf32>
    %cst_17 = arith.constant dense<0.000000e+00> : vector<8x32xf32>
    %114 = tpu.matmul %113, %1, %cst_17 {dimension_numbers = #tpu.dot_dimension_numbers<[1], [0], [0], [1], [0, 0, 1, 1], [], []>} : vector<8x128xf32>, vector<128x32xf32>, vector<8x32xf32> -> vector<8x32xf32>
    %115 = tpu.concatenate %9, %16, %23, %30, %37, %44, %51, %58, %65, %72, %79, %86, %93, %100, %107, %114 in 1 : vector<8x32xf32>, vector<8x32xf32>, vector<8x32xf32>, vector<8x32xf32>, vector<8x32xf32>, vector<8x32xf32>, vector<8x32xf32>, vector<8x32xf32>, vector<8x32xf32>, vector<8x32xf32>, vector<8x32xf32>, vector<8x32xf32>, vector<8x32xf32>, vector<8x32xf32>, vector<8x32xf32>, vector<8x32xf32> -> vector<8x512xf32>
    %c0_18 = arith.constant 0 : index
    %c0_19 = arith.constant 0 : index
    %116 = vector.load %arg3[%c0_18, %c0_19] : memref<512x128xf32, #tpu.memory_space<vmem>>, vector<512x128xf32>
    %cst_20 = arith.constant dense<0.000000e+00> : vector<8x128xf32>
    %117 = tpu.matmul %115, %116, %cst_20 {dimension_numbers = #tpu.dot_dimension_numbers<[1], [0], [0], [1], [0, 0, 1, 1], [], []>} : vector<8x512xf32>, vector<512x128xf32>, vector<8x128xf32> -> vector<8x128xf32>
    %c0_21 = arith.constant 0 : index
    %c0_22 = arith.constant 0 : index
    %118 = vector.load %arg4[%c0_21, %c0_22] : memref<1x128xf32, #tpu.memory_space<vmem>>, vector<1x128xf32>
    %119 = vector.broadcast %118 : vector<1x128xf32> to vector<8x128xf32>
    %120 = arith.addf %117, %119 : vector<8x128xf32>
    %121 = tpu.iota {dimensions = array<i32: 1>} : vector<8x128xi32>
    %c2_i32 = arith.constant 2 : i32
    %122 = vector.broadcast %c2_i32 : i32 to vector<8x128xi32>
    %123 = arith.cmpi slt, %121, %122 : vector<8x128xi32>
    %cst_23 = arith.constant -1.000000e+30 : f32
    %124 = vector.broadcast %cst_23 : f32 to vector<8x128xf32>
    %125 = arith.select %123, %120, %124 : vector<8x128xi1>, vector<8x128xf32>
    %cst_24 = arith.constant dense<0xFF800000> : vector<8xf32>
    %126 = vector.multi_reduction <maximumf>, %125, %cst_24 [1] : vector<8x128xf32> to vector<8xf32>
    %127 = vector.shape_cast %126 : vector<8xf32> to vector<8x1xf32>
    %128 = vector.broadcast %127 : vector<8x1xf32> to vector<8x128xf32>
    %129 = arith.subf %125, %128 : vector<8x128xf32>
    %130 = math.exp %129 : vector<8x128xf32>
    %cst_25 = arith.constant dense<0.000000e+00> : vector<8xf32>
    %131 = vector.multi_reduction <add>, %130, %cst_25 [1] : vector<8x128xf32> to vector<8xf32>
    %132 = vector.shape_cast %131 : vector<8xf32> to vector<8x1xf32>
    %133 = math.log %132 : vector<8x1xf32>
    %134 = vector.broadcast %133 : vector<8x1xf32> to vector<8x128xf32>
    %135 = arith.subf %129, %134 : vector<8x128xf32>
    %c0_26 = arith.constant 0 : index
    %c0_27 = arith.constant 0 : index
    %136 = vector.load %arg5[%c0_26, %c0_27] : memref<8x128xf32, #tpu.memory_space<vmem>>, vector<8x128xf32>
    tpu.vector_store %arg5[%c0_26, %c0_27], %135 {strides = array<i32>} : memref<8x128xf32, #tpu.memory_space<vmem>>, vector<8x128xf32>,
    return
  }
  func.func @transform_0(%arg0: i32) -> (i32, i32) {
    %c0_i32 = arith.constant 0 : i32
    %c0_i32_0 = arith.constant 0 : i32
    return %arg0, %c0_i32 : i32, i32
  }
  func.func @transform_1(%arg0: i32) -> (i32, i32) {
    %c0_i32 = arith.constant 0 : i32
    %c0_i32_0 = arith.constant 0 : i32
    %c0_i32_1 = arith.constant 0 : i32
    return %c0_i32, %c0_i32_0 : i32, i32
  }
  func.func @transform_2(%arg0: i32) -> (i32, i32) {
    %c0_i32 = arith.constant 0 : i32
    %c0_i32_0 = arith.constant 0 : i32
    %c0_i32_1 = arith.constant 0 : i32
    return %c0_i32, %c0_i32_0 : i32, i32
  }
  func.func @transform_3(%arg0: i32) -> (i32, i32) {
    %c0_i32 = arith.constant 0 : i32
    %c0_i32_0 = arith.constant 0 : i32
    %c0_i32_1 = arith.constant 0 : i32
    return %c0_i32, %c0_i32_0 : i32, i32
  }
  func.func @transform_4(%arg0: i32) -> (i32, i32) {
    %c0_i32 = arith.constant 0 : i32
    %c0_i32_0 = arith.constant 0 : i32
    return %arg0, %c0_i32 : i32, i32
  }
}

</mosaic_0001>

<bundles_post_ra>
// kernel: imdb_forward.1
= control target key start
LH: loop header
LB: loop body
LE: loop exit
PB: predicated region body
PF: predicated region fallthrough
CT: control target
= control target key end

     0   :  { %v784_v0 = vmov 2   ;;  %v785_v1 = vmov 1   ;;  %v786_v5 = vmov 7   ;;  %v787_v8 = vmov 3   ;;  %s802_s21 = smov 64   ;;  %s803_s22 = smov 96   ;;  %s1436_s0 = inlined_call_operand.vmem [shape: s32[8,16], index: 0, kind: input, shape index: {}]   ;;  %s1437_s1 = inlined_call_operand.vmem [shape: f32[128,32], index: 1, kind: input, shape index: {}]   ;;  %s1438_s3 = inlined_call_operand.vmem [shape: f32[1,128], index: 3, kind: input, shape index: {}]   ;;  %s1439_s2 = inlined_call_operand.vmem [shape: f32[512,128], index: 2, kind: input, shape index: {}]   ;;  %s1440_s4 = inlined_call_operand.vmem [shape: f32[8,128], index: 4, kind: output, shape index: {}]  }
   0x1   :  { %732 = vset.pattern.permute.xlu0 %v784_v0  ;;  %734 = vset.pattern.permute.xlu1 %v785_v1  ;;  %v832_v2 = vld [vmem:[%s1436_s0] sm:$0xff]  ;;  %v837_v3 = vld [vmem:[%s1437_s1 + $0x78] sm:$0xff]  ;;  %v844_v4 = vld [vmem:[%s1437_s1 + $0x70] sm:$0xff]  ;;  %v788_v9 = vmov 6   ;;  %v789_v11 = vmov 5   ;;  %v790_v15 = vmov 10   ;;  %v34_v30 = vlaneseq }
   0x2   :  { %63 = vperm.xlu1 %734, %v832_v2   ;;  %89 = vperm.xlu0 %732, %v832_v2   ;;  %v852_v6 = vld [vmem:[%s1437_s1 + $0x68] sm:$0xff]  ;;  %v860_v7 = vld [vmem:[%s1437_s1 + $0x60] sm:$0xff]  ;;  %v872_v10 = vld [vmem:[%s1437_s1 + $0x58] sm:$0xff]  ;;  %v791_v16 = vmov 9   ;;  %v792_v18 = vmov 11   ;;  %v793_v22 = vmov 14  }
   0x3   :  { %736 = vset.pattern.permute.xlu2 %v786_v5  ;;  %68 = vmatpush.msra.mxu1 %v837_v3  ;;  %v880_v12 = vld [vmem:[%s1437_s1 + $0x50] sm:$0xff]  ;;  %v888_v13 = vld [vmem:[%s1437_s1 + $0x48] sm:$0xff]  ;;  %v901_v14 = vld [vmem:[%s1437_s1 + $0x40] sm:$0xff]  ;;  %v794_v24 = vmov 15   ;;  %v795_v28 = vmov 13   ;;  %v796_v29 = vmov 0  }
   0x4   :  { %219 = vperm.xlu2 %736, %v832_v2   ;;  %94 = vmatpush.msra.mxu2 %v837_v3  ;;  %v909_v17 = vld [vmem:[%s1437_s1 + $0x38] sm:$0xff]  ;;  %v917_v19 = vld [vmem:[%s1437_s1 + $0x30] sm:$0xff]  ;;  %v925_v20 = vld [vmem:[%s1437_s1 + $0x28] sm:$0xff]  ;;  %v1056_v32 = vand.u32 127, %v34_v30  ;;  %v797_v33 = vmov 4   ;;  %v798_v36 = vmov 1.0  }
   0x5   :  { %69 = vmatpush.msra.mxu1 %v844_v4  ;;  %120 = vmatpush.msra.mxu3 %v837_v3  ;;  %v934_v21 = vld [vmem:[%s1437_s1 + $0x20] sm:$0xff]  ;;  %v943_v23 = vld [vmem:[%s1437_s1 + $0x18] sm:$0xff]  ;;  %v952_v25 = vld [vmem:[%s1437_s1 + $0x10] sm:$0xff]  ;;  %v799_v38 = vmov 8   ;;  %v800_v44 = vmov 12  }
   0x6   :  { %95 = vmatpush.msra.mxu2 %v844_v4  ;;  %42 = vmatpush.msra.mxu0 %v837_v3  ;;  %v961_v26 = vld [vmem:[%s1437_s1 + $0x8] sm:$0xff]  ;;  %v970_v27 = vld [vmem:[%s1437_s1] sm:$0xff]  ;;  %s801_s1 = smov 32   ;;  %v518_v30 = vld [vmem:[%s1439_s2 + $0x18] sm:$0xff] }
   0x7   :  { %70 = vmatpush.msra.mxu1 %v852_v6  ;;  %121 = vmatpush.msra.mxu3 %v844_v4 }
   0x8   :  { %96 = vmatpush.msra.mxu2 %v852_v6  ;;  %43 = vmatpush.msra.mxu0 %v844_v4 }
   0x9   :  { %71 = vmatpush.msra.mxu1 %v860_v7  ;;  %122 = vmatpush.msra.mxu3 %v852_v6 }
   0xa   :  { %733 = vset.pattern.permute.xlu0 %v787_v8  ;;  %735 = vset.pattern.permute.xlu1 %v788_v9  ;;  %v529_v8 = vld [vmem:[%s1439_s2 + $0x70] sm:$0xff] }
   0xb   :  { %115 = vperm.xlu0 %733, %v832_v2   ;;  %193 = vperm.xlu1 %735, %v832_v2   ;;  %v561_v9 = vld [vmem:[%s1439_s2 + $0x170] sm:$0xff] }
   0xc   :  { %737 = vset.pattern.permute.xlu2 %v789_v11  ;;  %97 = vmatpush.msra.mxu2 %v860_v7  ;;  %v560_v11 = vld [vmem:[%s1439_s2 + $0x168] sm:$0xff] }
   0xd   :  { %167 = vperm.xlu2 %737, %v832_v2   ;;  %72 = vmatpush.msra.mxu1 %v872_v10 }
   0xe   :  { %98 = vmatpush.msra.mxu2 %v872_v10  ;;  %123 = vmatpush.msra.mxu3 %v860_v7 }
   0xf   :  { %73 = vmatpush.msra.mxu1 %v880_v12  ;;  %44 = vmatpush.msra.mxu0 %v852_v6 }
  0x10   :  { %99 = vmatpush.msra.mxu2 %v880_v12  ;;  %124 = vmatpush.msra.mxu3 %v872_v10 }
  0x11   :  { %74 = vmatpush.msra.mxu1 %v888_v13  ;;  %45 = vmatpush.msra.mxu0 %v860_v7 }
  0x12   :  { %100 = vmatpush.msra.mxu2 %v888_v13  ;;  %125 = vmatpush.msra.mxu3 %v880_v12 }
  0x13   :  { %738 = vset.pattern.permute.xlu1 %v790_v15  ;;  %740 = vset.pattern.permute.xlu0 %v791_v16  ;;  %v558_v15 = vld [vmem:[%s1439_s2 + $0x158] sm:$0xff]  ;;  %v525_v16 = vld [vmem:[%s1439_s2 + $0x50] sm:$0xff] }
  0x14   :  { %297 = vperm.xlu1 %738, %v832_v2   ;;  %271 = vperm.xlu0 %740, %v832_v2  }
  0x15   :  { %739 = vset.pattern.permute.xlu2 %v792_v18  ;;  %75 = vmatpush.msra.mxu1 %v901_v14  ;;  %v556_v18 = vld [vmem:[%s1439_s2 + $0x148] sm:$0xff] }
  0x16   :  { %323 = vperm.xlu2 %739, %v832_v2   ;;  %101 = vmatpush.msra.mxu2 %v901_v14 }
  0x17   :  { %76 = vmatpush.msra.mxu1 %v909_v17  ;;  %126 = vmatpush.msra.mxu3 %v888_v13 }
  0x18   :  { %102 = vmatpush.msra.mxu2 %v909_v17  ;;  %46 = vmatpush.msra.mxu0 %v872_v10 }
  0x19   :  { %77 = vmatpush.msra.mxu1 %v917_v19  ;;  %127 = vmatpush.msra.mxu3 %v901_v14 }
  0x1a   :  { %103 = vmatpush.msra.mxu2 %v917_v19  ;;  %47 = vmatpush.msra.mxu0 %v880_v12 }
  0x1b   :  { %78 = vmatpush.msra.mxu1 %v925_v20  ;;  %128 = vmatpush.msra.mxu3 %v909_v17 }
  0x1c   :  { %741 = vset.pattern.permute.xlu1 %v793_v22  ;;  %104 = vmatpush.msra.mxu2 %v925_v20  ;;  %v522_v22 = vld [vmem:[%s1439_s2 + $0x38] sm:$0xff] }
  0x1d   :  { %401 = vperm.xlu1 %741, %v832_v2   ;;  %79 = vmatpush.msra.mxu1 %v934_v21 }
  0x1e   :  { %105 = vmatpush.msra.mxu2 %v934_v21  ;;  %742 = vset.pattern.permute.xlu2 %v794_v24 }
  0x1f   :  { %427 = vperm.xlu2 %742, %v832_v2   ;;  %80 = vmatpush.msra.mxu1 %v943_v23 }
  0x20   :  { %106 = vmatpush.msra.mxu2 %v943_v23  ;;  %129 = vmatpush.msra.mxu3 %v917_v19 }
  0x21   :  { %81 = vmatpush.msra.mxu1 %v952_v25  ;;  %48 = vmatpush.msra.mxu0 %v888_v13 }
  0x22   :  { %107 = vmatpush.msra.mxu2 %v952_v25  ;;  %130 = vmatpush.msra.mxu3 %v925_v20 }
  0x23   :  { %82 = vmatpush.msra.mxu1 %v961_v26  ;;  %49 = vmatpush.msra.mxu0 %v901_v14 }
  0x24   :  { %108 = vmatpush.msra.mxu2 %v961_v26  ;;  %131 = vmatpush.msra.mxu3 %v934_v21 }
  0x25   :  { %83 = vmatpush.msra.mxu1 %v970_v27  ;;  %50 = vmatpush.msra.mxu0 %v909_v17 }
  0x26   :  { %109 = vmatpush.msra.mxu2 %v970_v27  ;;  %132 = vmatpush.msra.mxu3 %v943_v23 }
  0x27   :  { %172 = vmatpush.msrb.mxu1 %v837_v3  ;;  %744 = vset.pattern.permute.xlu2 %v795_v28  ;;  %v519_v28 = vld [vmem:[%s1439_s2 + $0x20] sm:$0xff] }
  0x28   :  { %198 = vmatpush.msrb.mxu2 %v837_v3  ;;  %375 = vperm.xlu2 %744, %v832_v2  }
  0x29   :  { %173 = vmatpush.msrb.mxu1 %v844_v4  ;;  %133 = vmatpush.msra.mxu3 %v952_v25 }
  0x2a   :  { %199 = vmatpush.msrb.mxu2 %v844_v4  ;;  %51 = vmatpush.msra.mxu0 %v917_v19 }
  0x2b   :  { %174 = vmatpush.msrb.mxu1 %v852_v6  ;;  %134 = vmatpush.msra.mxu3 %v961_v26 }
  0x2c   :  { %200 = vmatpush.msrb.mxu2 %v852_v6  ;;  %52 = vmatpush.msra.mxu0 %v925_v20 }
  0x2d   :  { %175 = vmatpush.msrb.mxu1 %v860_v7  ;;  %135 = vmatpush.msra.mxu3 %v970_v27 }
  0x2e   :  { %201 = vmatpush.msrb.mxu2 %v860_v7  ;;  %53 = vmatpush.msra.mxu0 %v934_v21 }
  0x2f   :  { %176 = vmatpush.msrb.mxu1 %v872_v10  ;;  %224 = vmatpush.msrb.mxu3 %v837_v3 }
  0x30   :  { %202 = vmatpush.msrb.mxu2 %v872_v10  ;;  %54 = vmatpush.msra.mxu0 %v943_v23 }
  0x31   :  { %177 = vmatpush.msrb.mxu1 %v880_v12  ;;  %225 = vmatpush.msrb.mxu3 %v844_v4 }
  0x32   :  { %203 = vmatpush.msrb.mxu2 %v880_v12  ;;  %55 = vmatpush.msra.mxu0 %v952_v25 }
  0x33   :  { %178 = vmatpush.msrb.mxu1 %v888_v13  ;;  %226 = vmatpush.msrb.mxu3 %v852_v6 }
  0x34   :  { %204 = vmatpush.msrb.mxu2 %v888_v13  ;;  %56 = vmatpush.msra.mxu0 %v961_v26 }
  0x35   :  { %179 = vmatpush.msrb.mxu1 %v901_v14  ;;  %227 = vmatpush.msrb.mxu3 %v860_v7 }
  0x36   :  { %205 = vmatpush.msrb.mxu2 %v901_v14  ;;  %57 = vmatpush.msra.mxu0 %v970_v27 }
  0x37   :  { %180 = vmatpush.msrb.mxu1 %v909_v17  ;;  %228 = vmatpush.msrb.mxu3 %v872_v10 }
  0x38   :  { %206 = vmatpush.msrb.mxu2 %v909_v17  ;;  %146 = vmatpush.msrb.mxu0 %v837_v3 }
  0x39   :  { %181 = vmatpush.msrb.mxu1 %v917_v19  ;;  %229 = vmatpush.msrb.mxu3 %v880_v12 }
  0x3a   :  { %207 = vmatpush.msrb.mxu2 %v917_v19  ;;  %147 = vmatpush.msrb.mxu0 %v844_v4 }
  0x3b   :  { %182 = vmatpush.msrb.mxu1 %v925_v20  ;;  %230 = vmatpush.msrb.mxu3 %v888_v13 }
  0x3c   :  { %208 = vmatpush.msrb.mxu2 %v925_v20  ;;  %148 = vmatpush.msrb.mxu0 %v852_v6 }
  0x3d   :  { %183 = vmatpush.msrb.mxu1 %v934_v21  ;;  %231 = vmatpush.msrb.mxu3 %v901_v14 }
  0x3e   :  { %209 = vmatpush.msrb.mxu2 %v934_v21  ;;  %149 = vmatpush.msrb.mxu0 %v860_v7 }
  0x3f   :  { %184 = vmatpush.msrb.mxu1 %v943_v23  ;;  %232 = vmatpush.msrb.mxu3 %v909_v17 }
  0x40   :  { %210 = vmatpush.msrb.mxu2 %v943_v23  ;;  %150 = vmatpush.msrb.mxu0 %v872_v10 }
  0x41   :  { %185 = vmatpush.msrb.mxu1 %v952_v25  ;;  %233 = vmatpush.msrb.mxu3 %v917_v19 }
  0x42   :  { %211 = vmatpush.msrb.mxu2 %v952_v25  ;;  %151 = vmatpush.msrb.mxu0 %v880_v12 }
  0x43   :  { %186 = vmatpush.msrb.mxu1 %v961_v26  ;;  %234 = vmatpush.msrb.mxu3 %v925_v20 }
  0x44   :  { %212 = vmatpush.msrb.mxu2 %v961_v26  ;;  %152 = vmatpush.msrb.mxu0 %v888_v13 }
  0x45   :  { %187 = vmatpush.msrb.mxu1 %v970_v27  ;;  %235 = vmatpush.msrb.mxu3 %v934_v21 }
  0x46   :  { %213 = vmatpush.msrb.mxu2 %v970_v27  ;;  %153 = vmatpush.msrb.mxu0 %v901_v14 }
  0x47   :  { %236 = vmatpush.msrb.mxu3 %v943_v23  ;;  %743 = vset.pattern.permute.xlu1 %v796_v29  ;;  %v551_v29 = vld [vmem:[%s1439_s2 + $0x120] sm:$0xff] }
  0x48   :  { %154 = vmatpush.msrb.mxu0 %v909_v17  ;;  %37 = vperm.xlu1 %743, %v832_v2  }
  0x49   :  { %237 = vmatpush.msrb.mxu3 %v952_v25  ;;  %745 = vset.pattern.permute.xlu0 %v797_v33  ;;  %v549_v33 = vld [vmem:[%s1439_s2 + $0x110] sm:$0xff] }
  0x4a   :  { %155 = vmatpush.msrb.mxu0 %v917_v19  ;;  %141 = vperm.xlu0 %745, %v832_v2  }
  0x4b   :  { %238 = vmatpush.msrb.mxu3 %v961_v26  ;;  %747 = vset.pattern.permute.xlu2 %v800_v44  ;;  %v576_v44 = vld [vmem:[%s1439_s2 + $0x1e8] sm:$0xff] }
  0x4c   :  { %156 = vmatpush.msrb.mxu0 %v925_v20  ;;  %349 = vperm.xlu2 %747, %v832_v2  }
  0x4d   :  { %239 = vmatpush.msrb.mxu3 %v970_v27 }
  0x4e   :  { %157 = vmatpush.msrb.mxu0 %v934_v21 }
  0x50   :  { %158 = vmatpush.msrb.mxu0 %v943_v23  ;;  %746 = vset.pattern.permute.xlu1 %v799_v38  ;;  %v547_v38 = vld [vmem:[%s1439_s2 + $0x100] sm:$0xff] }
  0x51   :  { %245 = vperm.xlu1 %746, %v832_v2  }
  0x52   :  { %159 = vmatpush.msrb.mxu0 %v952_v25  ;;  %778 = vset.pattern.permute.xlu0 %v794_v24  ;;  %v521_v24 = vld [vmem:[%s1439_s2 + $0x30] sm:$0xff] }
  0x54   :  { %160 = vmatpush.msrb.mxu0 %v961_v26 }
  0x56   :  { %161 = vmatpush.msrb.mxu0 %v970_v27 }
  0x5e   :  { %v220_v31 = vpop.permute.xlu2 %219 }
  0x5f   :  { %vm221_vm5 = vcmp.eq.s32.totalorder %v220_v31, %v1056_v32  ;;  %v550_v31 = vld [vmem:[%s1439_s2 + $0x118] sm:$0xff] }
  0x67   :  { %v168_v37 = vpop.permute.xlu2 %167 }
  0x68   :  { %vm169_vm2 = vcmp.eq.s32.totalorder %v168_v37, %v1056_v32  ;;  %v515_v37 = vld [vmem:[%s1439_s2] sm:$0xff] }
  0x70   :  { %v324_v43 = vpop.permute.xlu2 %323 }
  0x71   :  { %vm325_vm8 = vcmp.eq.s32.totalorder %v324_v43, %v1056_v32  ;;  %v544_v43 = vld [vmem:[%s1439_s2 + $0xe8] sm:$0xff] }
  0x74   :  { %v64_v34 = vpop.permute.xlu1 %63  ;;  %v90_v35 = vpop.permute.xlu0 %89 }
  0x75   :  { %vm65_vm0 = vcmp.eq.s32.totalorder %v64_v34, %v1056_v32  ;;  %vm91_vm1 = vcmp.eq.s32.totalorder %v90_v35, %v1056_v32  ;;  %v517_v34 = vld [vmem:[%s1439_s2 + $0x10] sm:$0xff]  ;;  %v516_v35 = vld [vmem:[%s1439_s2 + $0x8] sm:$0xff] }
  0x76   :  { %683 = vmatmul.msk.f32.vlgmr.msra.gmra.mxu1 %vm65_vm0, %v798_v36  ;;  %685 = vmatmul.msk.f32.vlgmr.msra.gmra.mxu2 %vm91_vm1, %v798_v36  ;;  %vm500_vm0 = vcmask 261120   ;;  %vm502_vm1 = vcmask 523264  }
  0x77   :  { %276 = vmatpush.msra.mxu1 %v837_v3  ;;  %302 = vmatpush.msra.mxu2 %v837_v3 }
  0x79   :  { %277 = vmatpush.msra.mxu1 %v844_v4  ;;  %303 = vmatpush.msra.mxu2 %v844_v4  ;;  %v428_v45 = vpop.permute.xlu2 %427 }
  0x7a   :  { %vm429_vm11 = vcmp.eq.s32.totalorder %v428_v45, %v1056_v32  ;;  %v543_v45 = vld [vmem:[%s1439_s2 + $0xe0] sm:$0xff] }
  0x7b   :  { %278 = vmatpush.msra.mxu1 %v852_v6  ;;  %304 = vmatpush.msra.mxu2 %v852_v6 }
  0x7d   :  { %279 = vmatpush.msra.mxu1 %v860_v7  ;;  %305 = vmatpush.msra.mxu2 %v860_v7  ;;  %v116_v39 = vpop.permute.xlu0 %115  ;;  %v194_v40 = vpop.permute.xlu1 %193 }
  0x7e   :  { %vm117_vm3 = vcmp.eq.s32.totalorder %v116_v39, %v1056_v32  ;;  %vm195_vm4 = vcmp.eq.s32.totalorder %v194_v40, %v1056_v32  ;;  %691 = vmatmul.msk.f32.vlgmr.msrb.gmra.mxu1 %vm169_vm2, %v798_v36  ;;  %v546_v39 = vld [vmem:[%s1439_s2 + $0xf8] sm:$0xff]  ;;  %vm504_vm2 = vcmask 785408  }
  0x7f   :  { %280 = vmatpush.msra.mxu1 %v872_v10  ;;  %306 = vmatpush.msra.mxu2 %v872_v10  ;;  %v578_v40 = vld [vmem:[%s1439_s2 + $0x1f8] sm:$0xff] }
  0x80   :  { %687 = vmatmul.msk.f32.vlgmr.msra.gmra.mxu3 %vm117_vm3, %v798_v36  ;;  %693 = vmatmul.msk.f32.vlgmr.msrb.gmra.mxu2 %vm195_vm4, %v798_v36  ;;  %vm663_vm3 = vcmp.lt.s32.totalorder %v1056_v32, 2 }
  0x81   :  { %328 = vmatpush.msra.mxu3 %v837_v3  ;;  %281 = vmatpush.msra.mxu1 %v880_v12 }
  0x82   :  { %307 = vmatpush.msra.mxu2 %v880_v12  ;;  %v376_v46 = vpop.permute.xlu2 %375 }
  0x83   :  { %329 = vmatpush.msra.mxu3 %v844_v4  ;;  %282 = vmatpush.msra.mxu1 %v888_v13  ;;  %vm377_vm9 = vcmp.eq.s32.totalorder %v376_v46, %v1056_v32  ;;  %v575_v46 = vld [vmem:[%s1439_s2 + $0x1e0] sm:$0xff] }
  0x84   :  { %308 = vmatpush.msra.mxu2 %v888_v13 }
  0x85   :  { %330 = vmatpush.msra.mxu3 %v852_v6  ;;  %283 = vmatpush.msra.mxu1 %v901_v14 }
  0x86   :  { %309 = vmatpush.msra.mxu2 %v901_v14  ;;  %v272_v41 = vpop.permute.xlu0 %271  ;;  %v298_v42 = vpop.permute.xlu1 %297 }
  0x87   :  { %331 = vmatpush.msra.mxu3 %v860_v7  ;;  %284 = vmatpush.msra.mxu1 %v909_v17  ;;  %vm273_vm6 = vcmp.eq.s32.totalorder %v272_v41, %v1056_v32  ;;  %vm299_vm7 = vcmp.eq.s32.totalorder %v298_v42, %v1056_v32  ;;  %v545_v41 = vld [vmem:[%s1439_s2 + $0xf0] sm:$0xff] }
  0x88   :  { %310 = vmatpush.msra.mxu2 %v909_v17  ;;  %695 = vmatmul.msk.f32.vlgmr.msrb.gmra.mxu3 %vm221_vm5, %v798_v36  ;;  %v577_v42 = vld [vmem:[%s1439_s2 + $0x1f0] sm:$0xff] }
  0x89   :  { %332 = vmatpush.msra.mxu3 %v872_v10  ;;  %285 = vmatpush.msra.mxu1 %v917_v19 }
  0x8a   :  { %311 = vmatpush.msra.mxu2 %v917_v19 }
  0x8b   :  { %333 = vmatpush.msra.mxu3 %v880_v12  ;;  %286 = vmatpush.msra.mxu1 %v925_v20 }
  0x8c   :  { %312 = vmatpush.msra.mxu2 %v925_v20 }
  0x8d   :  { %334 = vmatpush.msra.mxu3 %v888_v13  ;;  %287 = vmatpush.msra.mxu1 %v934_v21 }
  0x8e   :  { %313 = vmatpush.msra.mxu2 %v934_v21 }
  0x8f   :  { %335 = vmatpush.msra.mxu3 %v901_v14  ;;  %288 = vmatpush.msra.mxu1 %v943_v23  ;;  %v402_v47 = vpop.permute.xlu1 %401 }
  0x90   :  { %314 = vmatpush.msra.mxu2 %v943_v23  ;;  %vm403_vm10 = vcmp.eq.s32.totalorder %v402_v47, %v1056_v32 }
  0x91   :  { %336 = vmatpush.msra.mxu3 %v909_v17  ;;  %289 = vmatpush.msra.mxu1 %v952_v25 }
  0x92   :  { %315 = vmatpush.msra.mxu2 %v952_v25 }
  0x93   :  { %337 = vmatpush.msra.mxu3 %v917_v19  ;;  %290 = vmatpush.msra.mxu1 %v961_v26 }
  0x94   :  { %316 = vmatpush.msra.mxu2 %v961_v26 }
  0x95   :  { %338 = vmatpush.msra.mxu3 %v925_v20  ;;  %291 = vmatpush.msra.mxu1 %v970_v27 }
  0x96   :  { %317 = vmatpush.msra.mxu2 %v970_v27  ;;  %699 = vmatmul.msk.f32.vlgmr.msra.gmra.mxu1 %vm273_vm6, %v798_v36 }
  0x97   :  { %701 = vmatmul.msk.f32.vlgmr.msra.gmra.mxu2 %vm299_vm7, %v798_v36  ;;  %339 = vmatpush.msra.mxu3 %v934_v21 }
  0x98   :  { %380 = vmatpush.msrb.mxu1 %v837_v3  ;;  %406 = vmatpush.msrb.mxu2 %v837_v3 }
  0x99   :  { %340 = vmatpush.msra.mxu3 %v943_v23 }
  0x9a   :  { %381 = vmatpush.msrb.mxu1 %v844_v4  ;;  %407 = vmatpush.msrb.mxu2 %v844_v4 }
  0x9b   :  { %341 = vmatpush.msra.mxu3 %v952_v25 }
  0x9c   :  { %382 = vmatpush.msrb.mxu1 %v852_v6  ;;  %408 = vmatpush.msrb.mxu2 %v852_v6 }
  0x9d   :  { %342 = vmatpush.msra.mxu3 %v961_v26 }
  0x9e   :  { %383 = vmatpush.msrb.mxu1 %v860_v7  ;;  %409 = vmatpush.msrb.mxu2 %v860_v7 }
  0x9f   :  { %343 = vmatpush.msra.mxu3 %v970_v27 }
  0xa0   :  { %384 = vmatpush.msrb.mxu1 %v872_v10  ;;  %703 = vmatmul.msk.f32.vlgmr.msra.gmra.mxu3 %vm325_vm8, %v798_v36 }
  0xa1   :  { %410 = vmatpush.msrb.mxu2 %v872_v10  ;;  %432 = vmatpush.msrb.mxu3 %v837_v3 }
  0xa2   :  { %385 = vmatpush.msrb.mxu1 %v880_v12 }
  0xa3   :  { %411 = vmatpush.msrb.mxu2 %v880_v12  ;;  %433 = vmatpush.msrb.mxu3 %v844_v4 }
  0xa4   :  { %386 = vmatpush.msrb.mxu1 %v888_v13 }
  0xa5   :  { %412 = vmatpush.msrb.mxu2 %v888_v13  ;;  %434 = vmatpush.msrb.mxu3 %v852_v6 }
  0xa6   :  { %387 = vmatpush.msrb.mxu1 %v901_v14  ;;  %v350_v53 = vpop.permute.xlu2 %349 }
  0xa7   :  { %413 = vmatpush.msrb.mxu2 %v901_v14  ;;  %435 = vmatpush.msrb.mxu3 %v860_v7  ;;  %vm351_vm15 = vcmp.eq.s32.totalorder %v350_v53, %v1056_v32  ;;  %v572_v53 = vld [vmem:[%s1439_s2 + $0x1c8] sm:$0xff] }
  0xa8   :  { %388 = vmatpush.msrb.mxu1 %v909_v17 }
  0xa9   :  { %414 = vmatpush.msrb.mxu2 %v909_v17  ;;  %436 = vmatpush.msrb.mxu3 %v872_v10 }
  0xaa   :  { %389 = vmatpush.msrb.mxu1 %v917_v19 }
  0xab   :  { %415 = vmatpush.msrb.mxu2 %v917_v19  ;;  %437 = vmatpush.msrb.mxu3 %v880_v12 }
  0xac   :  { %390 = vmatpush.msrb.mxu1 %v925_v20 }
  0xad   :  { %416 = vmatpush.msrb.mxu2 %v925_v20  ;;  %438 = vmatpush.msrb.mxu3 %v888_v13 }
  0xae   :  { %391 = vmatpush.msrb.mxu1 %v934_v21 }
  0xaf   :  { %417 = vmatpush.msrb.mxu2 %v934_v21  ;;  %439 = vmatpush.msrb.mxu3 %v901_v14 }
  0xb0   :  { %392 = vmatpush.msrb.mxu1 %v943_v23 }
  0xb1   :  { %418 = vmatpush.msrb.mxu2 %v943_v23  ;;  %440 = vmatpush.msrb.mxu3 %v909_v17 }
  0xb2   :  { %393 = vmatpush.msrb.mxu1 %v952_v25 }
  0xb3   :  { %419 = vmatpush.msrb.mxu2 %v952_v25  ;;  %441 = vmatpush.msrb.mxu3 %v917_v19 }
  0xb4   :  { %394 = vmatpush.msrb.mxu1 %v961_v26 }
  0xb5   :  { %420 = vmatpush.msrb.mxu2 %v961_v26  ;;  %442 = vmatpush.msrb.mxu3 %v925_v20 }
  0xb6   :  { %395 = vmatpush.msrb.mxu1 %v970_v27 }
  0xb7   :  { %707 = vmatmul.msk.f32.vlgmr.msrb.gmra.mxu1 %vm377_vm9, %v798_v36  ;;  %421 = vmatpush.msrb.mxu2 %v970_v27 }
  0xb8   :  { %443 = vmatpush.msrb.mxu3 %v934_v21  ;;  %709 = vmatmul.msk.f32.vlgmr.msrb.gmra.mxu2 %vm403_vm10, %v798_v36 }
  0xb9   :  { %603 = vmatpush.msra.mxu1 %v546_v39 }
  0xba   :  { %444 = vmatpush.msrb.mxu3 %v943_v23  ;;  %v38_v48 = vpop.permute.xlu1 %37 }
  0xbb   :  { %vm39_vm12 = vcmp.eq.s32.totalorder %v38_v48, %v1056_v32  ;;  %604 = vmatpush.msra.mxu1 %v545_v41  ;;  %v542_v48 = vld [vmem:[%s1439_s2 + $0xd8] sm:$0xff] }
  0xbc   :  { %445 = vmatpush.msrb.mxu3 %v952_v25  ;;  %681 = vmatmul.msk.f32.vlgmr.msra.gmra.mxu0 %vm39_vm12, %v798_v36  ;;  %v142_v49 = vpop.permute.xlu0 %141 }
  0xbd   :  { %250 = vmatpush.msra.mxu0 %v837_v3  ;;  %vm143_vm13 = vcmp.eq.s32.totalorder %v142_v49, %v1056_v32  ;;  %605 = vmatpush.msra.mxu1 %v544_v43  ;;  %v574_v49 = vld [vmem:[%s1439_s2 + $0x1d8] sm:$0xff] }
  0xbe   :  { %446 = vmatpush.msrb.mxu3 %v961_v26 }
  0xbf   :  { %251 = vmatpush.msra.mxu0 %v844_v4  ;;  %606 = vmatpush.msra.mxu1 %v543_v45 }
  0xc0   :  { %447 = vmatpush.msrb.mxu3 %v970_v27 }
  0xc1   :  { %711 = vmatmul.msk.f32.vlgmr.msrb.gmra.mxu3 %vm429_vm11, %v798_v36  ;;  %252 = vmatpush.msra.mxu0 %v852_v6 }
  0xc2   :  { %643 = vmatpush.msra.mxu3 %v578_v40  ;;  %607 = vmatpush.msra.mxu1 %v542_v48 }
  0xc3   :  { %253 = vmatpush.msra.mxu0 %v860_v7  ;;  %v246_v50 = vpop.permute.xlu1 %245 }
  0xc4   :  { %689 = vmatmul.msk.f32.vlgmr.msrb.gmra.mxu0 %vm143_vm13, %v798_v36  ;;  %vm247_vm14 = vcmp.eq.s32.totalorder %v246_v50, %v1056_v32  ;;  %644 = vmatpush.msra.mxu3 %v577_v42  ;;  %v541_v50 = vld [vmem:[%s1439_s2 + $0xd0] sm:$0xff]  ;;  %v779_v42 = vld [vmem:[%s1438_s3] ss:$0 sm:$0xff] }
  0xc5   :  { %254 = vmatpush.msra.mxu0 %v872_v10  ;;  %608 = vmatpush.msra.mxu1 %v541_v50 }
  0xc6   :  { %645 = vmatpush.msra.mxu3 %v576_v44 }
  0xc7   :  { %255 = vmatpush.msra.mxu0 %v880_v12 }
  0xc8   :  { %646 = vmatpush.msra.mxu3 %v575_v46 }
  0xc9   :  { %256 = vmatpush.msra.mxu0 %v888_v13 }
  0xca   :  { %647 = vmatpush.msra.mxu3 %v574_v49 }
  0xcb   :  { %257 = vmatpush.msra.mxu0 %v901_v14 }
  0xcd   :  { %258 = vmatpush.msra.mxu0 %v909_v17 }
  0xcf   :  { %259 = vmatpush.msra.mxu0 %v917_v19 }
  0xd1   :  { %260 = vmatpush.msra.mxu0 %v925_v20 }
  0xd3   :  { %261 = vmatpush.msra.mxu0 %v934_v21 }
  0xd5   :  { %262 = vmatpush.msra.mxu0 %v943_v23 }
  0xd7   :  { %263 = vmatpush.msra.mxu0 %v952_v25 }
  0xd9   :  { %264 = vmatpush.msra.mxu0 %v961_v26 }
  0xdb   :  { %265 = vmatpush.msra.mxu0 %v970_v27 }
  0xdc   :  { %697 = vmatmul.msk.f32.vlgmr.msra.gmra.mxu0 %vm247_vm14, %v798_v36 }
  0xdd   :  { %354 = vmatpush.msrb.mxu0 %v837_v3 }
  0xdf   :  { %355 = vmatpush.msrb.mxu0 %v844_v4 }
  0xe1   :  { %356 = vmatpush.msrb.mxu0 %v852_v6  ;;  %v530_v6 = vld [vmem:[%s1439_s2 + $0x78] sm:$0xff] }
  0xe3   :  { %357 = vmatpush.msrb.mxu0 %v860_v7  ;;  %v562_v7 = vld [vmem:[%s1439_s2 + $0x178] sm:$0xff] }
  0xe4   :  { %623 = vmatpush.msra.mxu2 %v562_v7 }
  0xe5   :  { %358 = vmatpush.msrb.mxu0 %v872_v10  ;;  %v528_v10 = vld [vmem:[%s1439_s2 + $0x68] sm:$0xff] }
  0xe6   :  { %624 = vmatpush.msra.mxu2 %v561_v9  ;;  %v565_v9 = vld [vmem:[%s1439_s2 + $0x190] sm:$0xff] }
  0xe7   :  { %359 = vmatpush.msrb.mxu0 %v880_v12  ;;  %v527_v12 = vld [vmem:[%s1439_s2 + $0x60] sm:$0xff] }
  0xe8   :  { %625 = vmatpush.msra.mxu2 %v560_v11 }
  0xe9   :  { %360 = vmatpush.msrb.mxu0 %v888_v13  ;;  %v559_v13 = vld [vmem:[%s1439_s2 + $0x160] sm:$0xff] }
  0xea   :  { %626 = vmatpush.msra.mxu2 %v559_v13 }
  0xeb   :  { %361 = vmatpush.msrb.mxu0 %v901_v14  ;;  %v526_v14 = vld [vmem:[%s1439_s2 + $0x58] sm:$0xff] }
  0xec   :  { %627 = vmatpush.msra.mxu2 %v558_v15 }
  0xed   :  { %362 = vmatpush.msrb.mxu0 %v909_v17  ;;  %v557_v17 = vld [vmem:[%s1439_s2 + $0x150] sm:$0xff] }
  0xee   :  { %628 = vmatpush.msra.mxu2 %v557_v17  ;;  %v532_v17 = vld [vmem:[%s1439_s2 + $0x88] sm:$0xff] }
  0xef   :  { %363 = vmatpush.msrb.mxu0 %v917_v19  ;;  %v524_v19 = vld [vmem:[%s1439_s2 + $0x48] sm:$0xff] }
  0xf0   :  { %629 = vmatpush.msra.mxu2 %v556_v18  ;;  %v564_v18 = vld [vmem:[%s1439_s2 + $0x188] sm:$0xff] }
  0xf1   :  { %364 = vmatpush.msrb.mxu0 %v925_v20  ;;  %v523_v20 = vld [vmem:[%s1439_s2 + $0x40] sm:$0xff] }
  0xf3   :  { %v85_v51 = vpop.f32.mrf.mxu1  ;;  %365 = vmatpush.msrb.mxu0 %v934_v21  ;;  %v555_v21 = vld [vmem:[%s1439_s2 + $0x140] sm:$0xff] }
  0xf4   :  { %630 = vmatpush.msra.mxu2 %v555_v21  ;;  %v531_v21 = vld [vmem:[%s1439_s2 + $0x80] sm:$0xff] }
  0xf5   :  { %366 = vmatpush.msrb.mxu0 %v943_v23  ;;  %v554_v23 = vld [vmem:[%s1439_s2 + $0x138] sm:$0xff] }
  0xf6   :  { %631 = vmatpush.msra.mxu2 %v554_v23 }
  0xf7   :  { %367 = vmatpush.msrb.mxu0 %v952_v25  ;;  %v553_v25 = vld [vmem:[%s1439_s2 + $0x130] sm:$0xff] }
  0xf8   :  { %632 = vmatpush.msra.mxu2 %v553_v25 }
  0xf9   :  { %v111_v52 = vpop.f32.mrf.mxu2  ;;  %368 = vmatpush.msrb.mxu0 %v961_v26  ;;  %v520_v26 = vld [vmem:[%s1439_s2 + $0x28] sm:$0xff] }
  0xfb   :  { %v189_v54 = vpop.f32.mrf.mxu1  ;;  %369 = vmatpush.msrb.mxu0 %v970_v27  ;;  %v552_v27 = vld [vmem:[%s1439_s2 + $0x128] sm:$0xff] }
  0xfc   :  { %705 = vmatmul.msk.f32.vlgmr.msrb.gmra.mxu0 %vm351_vm15, %v798_v36  ;;  %633 = vmatpush.msra.mxu2 %v552_v27  ;;  %v548_v36 = vld [vmem:[%s1439_s2 + $0x108] sm:$0xff] }
  0xfd   :  { %583 = vmatpush.msra.mxu0 %v530_v6 }
  0xfe   :  { %634 = vmatpush.msra.mxu2 %v551_v29 }
  0xff   :  { %584 = vmatpush.msra.mxu0 %v529_v8  ;;  %v533_v8 = vld [vmem:[%s1439_s2 + $0x90] sm:$0xff] }
 0x100   :  { %635 = vmatpush.msra.mxu2 %v550_v31 }
 0x101   :  { %585 = vmatpush.msra.mxu0 %v528_v10 }
 0x102   :  { %636 = vmatpush.msra.mxu2 %v549_v33 }
 0x103   :  { %v215_v55 = vpop.f32.mrf.mxu2  ;;  %v137_v56 = vpop.f32.mrf.mxu3  ;;  %586 = vmatpush.msra.mxu0 %v527_v12 }
 0x104   :  { %637 = vmatpush.msra.mxu2 %v548_v36 }
 0x105   :  { %587 = vmatpush.msra.mxu0 %v526_v14 }
 0x106   :  { %638 = vmatpush.msra.mxu2 %v547_v38 }
 0x107   :  { %588 = vmatpush.msra.mxu0 %v525_v16 }
 0x109   :  { %589 = vmatpush.msra.mxu0 %v524_v19 }
 0x10b   :  { %v241_v59 = vpop.f32.mrf.mxu3  ;;  %590 = vmatpush.msra.mxu0 %v523_v20 }
 0x10d   :  { %591 = vmatpush.msra.mxu0 %v522_v22  ;;  %v563_v22 = vld [vmem:[%s1439_s2 + $0x180] sm:$0xff] }
 0x10f   :  { %592 = vmatpush.msra.mxu0 %v521_v24 }
 0x111   :  { %593 = vmatpush.msra.mxu0 %v520_v26 }
 0x113   :  { %v293_v57 = vpop.f32.mrf.mxu1  ;;  %594 = vmatpush.msra.mxu0 %v519_v28 }
 0x114   :  { %v748_v58 = vpack.i.bf16 %v85_v51, %v293_v57  ;;  %v573_v51 = vld [vmem:[%s1439_s2 + $0x1d0] sm:$0xff]  ;;  %v538_v57 = vld [vmem:[%s1439_s2 + $0xb8] sm:$0xff] }
 0x115   :  { %595 = vmatpush.msra.mxu0 %v518_v30  ;;  %648 = vmatpush.msra.mxu3 %v573_v51 }
 0x116   :  { %749 = vrot.lane.b32.xlu1 %v748_v58, %s801_s1  ;;  %v570_v58 = vld [vmem:[%s1439_s2 + $0x1b8] sm:$0xff] }
 0x117   :  { %596 = vmatpush.msra.mxu0 %v517_v34  ;;  %649 = vmatpush.msra.mxu3 %v572_v53 }
 0x119   :  { %597 = vmatpush.msra.mxu0 %v516_v35 }
 0x11a   :  { %v319_v60 = vpop.f32.mrf.mxu2 }
 0x11b   :  { %v753_v61 = vpack.i.bf16 %v111_v52, %v319_v60  ;;  %598 = vmatpush.msra.mxu0 %v515_v37  ;;  %v540_v52 = vld [vmem:[%s1439_s2 + $0xc8] sm:$0xff]  ;;  %v569_v60 = vld [vmem:[%s1439_s2 + $0x1b0] sm:$0xff] }
 0x11c   :  { %609 = vmatpush.msra.mxu1 %v540_v52 }
 0x11d   :  { %754 = vrot.lane.b32.xlu2 %v753_v61, %s802_s21  ;;  %v536_v61 = vld [vmem:[%s1439_s2 + $0xa8] sm:$0xff] }
 0x123   :  { %v345_v62 = vpop.f32.mrf.mxu3 }
 0x124   :  { %v758_v63 = vpack.i.bf16 %v137_v56, %v345_v62  ;;  %v571_v56 = vld [vmem:[%s1439_s2 + $0x1c0] sm:$0xff]  ;;  %v568_v62 = vld [vmem:[%s1439_s2 + $0x1a8] sm:$0xff] }
 0x125   :  { %650 = vmatpush.msra.mxu3 %v571_v56 }
 0x126   :  { %759 = vrot.lane.b32.xlu0 %v758_v63, %s803_s22 }
 0x127   :  { %651 = vmatpush.msra.mxu3 %v570_v58 }
 0x129   :  { %652 = vmatpush.msra.mxu3 %v569_v60 }
 0x12b   :  { %653 = vmatpush.msra.mxu3 %v568_v62 }
 0x134   :  { %v397_v0 = vpop.f32.mrf.mxu1 }
 0x135   :  { %v763_v1 = vpack.i.bf16 %v189_v54, %v397_v0  ;;  %v535_v0 = vld [vmem:[%s1439_s2 + $0xa0] sm:$0xff] }
 0x137   :  { %764 = vrot.lane.b32.xlu1 %v763_v1, %s801_s1  ;;  %v567_v1 = vld [vmem:[%s1439_s2 + $0x1a0] sm:$0xff] }
 0x138   :  { %654 = vmatpush.msra.mxu3 %v567_v1 }
 0x139   :  { %v59_v47 = vpop.f32.mrf.mxu0 }
 0x13b   :  { %v423_v2 = vpop.f32.mrf.mxu2 }
 0x13c   :  { %v768_v3 = vpack.i.bf16 %v215_v55, %v423_v2  ;;  %v539_v55 = vld [vmem:[%s1439_s2 + $0xc0] sm:$0xff] }
 0x13d   :  { %610 = vmatpush.msra.mxu1 %v539_v55 }
 0x13e   :  { %769 = vrot.lane.b32.xlu2 %v768_v3, %s802_s21 }
 0x13f   :  { %611 = vmatpush.msra.mxu1 %v538_v57 }
 0x141   :  { %v1360_v54 = vpop.f32.mrf.mxu0 }
 0x144   :  { %v449_v4 = vpop.f32.mrf.mxu3 }
 0x145   :  { %v773_v5 = vpack.i.bf16 %v241_v59, %v449_v4  ;;  %v537_v59 = vld [vmem:[%s1439_s2 + $0xb0] sm:$0xff]  ;;  %v534_v4 = vld [vmem:[%s1439_s2 + $0x98] sm:$0xff] }
 0x146   :  { %612 = vmatpush.msra.mxu1 %v537_v59 }
 0x147   :  { %774 = vrot.lane.b32.xlu0 %v773_v5, %s803_s22  ;;  %v566_v5 = vld [vmem:[%s1439_s2 + $0x198] sm:$0xff] }
 0x148   :  { %613 = vmatpush.msra.mxu1 %v536_v61  ;;  %655 = vmatpush.msra.mxu3 %v566_v5 }
 0x14a   :  { %614 = vmatpush.msra.mxu1 %v535_v0  ;;  %656 = vmatpush.msra.mxu3 %v565_v9 }
 0x14c   :  { %615 = vmatpush.msra.mxu1 %v534_v4  ;;  %657 = vmatpush.msra.mxu3 %v564_v18 }
 0x14e   :  { %616 = vmatpush.msra.mxu1 %v533_v8  ;;  %658 = vmatpush.msra.mxu3 %v563_v22 }
 0x150   :  { %617 = vmatpush.msra.mxu1 %v532_v17 }
 0x152   :  { %618 = vmatpush.msra.mxu1 %v531_v21 }
 0x159   :  { %v267_v6 = vpop.f32.mrf.mxu0 }
 0x177   :  { %v755_v7 = vpop.permute.xlu2 %754 }
 0x178   :  { %v757_v12 = vunpack.i.h.bf16 %v755_v7  ;;  %v756_v13 = vunpack.i.l.bf16 %v755_v7 }
 0x179   :  { %v371_v28 = vpop.f32.mrf.mxu0 }
 0x188   :  { %v750_v63 = vpop.permute.xlu1 %749 }
 0x189   :  { %v752_v2 = vunpack.i.h.bf16 %v750_v63  ;;  %v751_v3 = vunpack.i.l.bf16 %v750_v63 }
 0x18b   :  { %v509_v10 = vsel %vm500_vm0, %v267_v6, %v751_v3  ;;  %v501_v11 = vsel %vm500_vm0, %v59_v47, %v752_v2 }
 0x18c   :  { %v510_v19 = vsel %vm502_vm1, %v509_v10, %v756_v13  ;;  %v503_v20 = vsel %vm502_vm1, %v501_v11, %v757_v12 }
 0x198   :  { %v760_v14 = vpop.permute.xlu0 %759  ;;  %v770_v29 = vpop.permute.xlu2 %769 }
 0x199   :  { %v762_v15 = vunpack.i.h.bf16 %v760_v14  ;;  %v761_v16 = vunpack.i.l.bf16 %v760_v14  ;;  %v772_v33 = vunpack.i.h.bf16 %v770_v29  ;;  %v771_v34 = vunpack.i.l.bf16 %v770_v29 }
 0x19b   :  { %v505_v23 = vsel %vm504_vm2, %v503_v20, %v762_v15  ;;  %v511_v24 = vsel %vm504_vm2, %v510_v19, %v761_v16 }
 0x19c   :  { %599 = vmatmul.f32.vlgmr.msra.gmra.mxu0 %v505_v23  ;;  %639 = vmatmul.f32.vlgmr.msra.gmra.mxu2 %v511_v24 }
 0x1a9   :  { %v765_v25 = vpop.permute.xlu1 %764 }
 0x1aa   :  { %v767_v26 = vunpack.i.h.bf16 %v765_v25  ;;  %v766_v27 = vunpack.i.l.bf16 %v765_v25 }
 0x1ac   :  { %v506_v30 = vsel %vm500_vm0, %v1360_v54, %v767_v26  ;;  %v512_v31 = vsel %vm500_vm0, %v371_v28, %v766_v27 }
 0x1ad   :  { %v513_v38 = vsel %vm502_vm1, %v512_v31, %v771_v34  ;;  %v507_v39 = vsel %vm502_vm1, %v506_v30, %v772_v33 }
 0x1b9   :  { %v775_v35 = vpop.permute.xlu0 %774 }
 0x1ba   :  { %v777_v36 = vunpack.i.h.bf16 %v775_v35  ;;  %v776_v37 = vunpack.i.l.bf16 %v775_v35 }
 0x1bc   :  { %v508_v40 = vsel %vm504_vm2, %v507_v39, %v777_v36  ;;  %v514_v41 = vsel %vm504_vm2, %v513_v38, %v776_v37 }
 0x1bd   :  { %619 = vmatmul.f32.vlgmr.msra.gmra.mxu1 %v508_v40  ;;  %659 = vmatmul.f32.vlgmr.msra.gmra.mxu3 %v514_v41 }
 0x219   :  { %v600_v43 = vpop.f32.mrf.mxu0 }
 0x21a   :  { %v601_v44 = vadd.f32 %v779_v42, %v600_v43 }
 0x21f   :  { %v640_v47 = vpop.f32.mrf.mxu2 }
 0x23a   :  { %v620_v45 = vpop.f32.mrf.mxu1 }
 0x23b   :  { %v621_v46 = vadd.f32 %v620_v45, %v601_v44 }
 0x23d   :  { %v641_v48 = vadd.f32 %v640_v47, %v621_v46 }
 0x240   :  { %v660_v49 = vpop.f32.mrf.mxu3 }
 0x241   :  { %v661_v50 = vadd.f32 %v660_v49, %v641_v48 }
 0x243   :  { %v664_v51 = vsel %vm663_vm3, %v661_v50, -1e+30 }
 0x244   :  { %665 = vmax.xlane.f32.xlu1 %v664_v51 }
 0x2b7   :  { %v666_v52 = vpop.xlane.xlu1 %665 }
 0x2b8   :  { %v667_v53 = vsub.f32 %v664_v51, %v666_v52 }
 0x2ba   :  { %v668_v54 = vmul.f32 1.442695, %v667_v53 }
 0x2bc   :  { %780 = vpow2.f32 %v668_v54 }
 0x2c2   :  { %v781_v55 = vpop.eup %780 }
 0x2c3   :  { %670 = vadd.xlane.f32.xlu2 %v781_v55 }
 0x336   :  { %v671_v56 = vpop.xlane.xlu2 %670 }
 0x337   :  { %782 = vlog2.f32 %v671_v56 }
 0x33d   :  { %v783_v57 = vpop.eup %782 }
 0x33e   :  { %v673_v58 = vmul.f32 0.6931472, %v783_v57 }
 0x340   :  { %v674_v59 = vsub.f32 %v667_v53, %v673_v58 }
 0x342   :  { %675 = vst [vmem:[%s1440_s4] sm:$0xff] %v674_v59 }

</bundles_post_ra>
